<compile_context>
chip_gen: v7x
topology: tpu7x:2x2x1
jax: 0.10.0
libtpu: 0.0.40
codegen_flags: <defaults>
</compile_context>

<pallas_src>
import functools
from typing import NamedTuple, Optional, Sequence, Tuple

import jax
import jax.numpy as jnp
from jax.experimental import pallas as pl
from jax.experimental.pallas import tpu as pltpu

_SCRATCH_MARGIN = 2 * 1024 * 1024  # headroom for Mosaic internal scratch


def _round_up(n: int, m: int) -> int:
    return ((n + m - 1) // m) * m


def _device_kind() -> str:
    try:
        return (jax.devices()[0].device_kind or "").lower()
    except Exception:
        return ""


def _vmem_capacity_bytes() -> int:
    try:
        cap = int(pltpu.get_tpu_info().vmem_capacity_bytes)
        if cap > 0:
            return cap
    except Exception:
        pass
    kind = _device_kind()
    if "v7" in kind:
        return 64 * 1024 * 1024  # per-TC on v7x
    return 128 * 1024 * 1024  # v5e / v6e


def _default_tile_m() -> int:
    kind = _device_kind()
    if "v7" in kind or kind == "":
        return 256  # 64 MiB/TC: keep TM modest, megacore shards the grid
    return 512  # v5e/v6e: 128 MiB VMEM; bigger M tiles amortize per-step overhead


# ---------------------------------------------------------------------------
# One-time parameter preparation (hoisted out of the per-call path).
# ---------------------------------------------------------------------------


class PreparedMLP(NamedTuple):
    weights: Tuple[jnp.ndarray, ...]  # per layer: (in_pad, out_pad) bf16, zero padded
    biases: jnp.ndarray               # (L, max_out_pad) f32, zero padded
    in_sizes: Tuple[int, ...]
    out_sizes: Tuple[int, ...]
    in_pads: Tuple[int, ...]
    out_pads: Tuple[int, ...]


def prepare_mlp_proj_params(params) -> PreparedMLP:
    """Pad feature dims to 128 lanes and cast weights to bf16 ONCE."""
    L = len(params)
    in_sizes = tuple(w.shape[0] for (w, _) in params)
    out_sizes = tuple(w.shape[1] for (w, _) in params)
    for li in range(L - 1):
        assert out_sizes[li] == in_sizes[li + 1], "layer size mismatch"
    in_pads = tuple(_round_up(s, 128) for s in in_sizes)
    out_pads = tuple(_round_up(s, 128) for s in out_sizes)
    max_out = max(out_pads)

    weights = []
    biases = jnp.zeros((L, max_out), jnp.float32)
    for li, (w, b) in enumerate(params):
        fi, fo = w.shape
        wp = jnp.zeros((in_pads[li], out_pads[li]), jnp.bfloat16)
        wp = wp.at[:fi, :fo].set(w.astype(jnp.bfloat16))
        weights.append(wp)
        biases = biases.at[li, :fo].set(jnp.reshape(b, (-1,)).astype(jnp.float32))

    weights = tuple(jax.block_until_ready(w) for w in weights)
    biases = jax.block_until_ready(biases)
    return PreparedMLP(weights, biases, in_sizes, out_sizes, in_pads, out_pads)


# ---------------------------------------------------------------------------
# Fused path: whole MLP in one pallas_call, weights resident in VMEM.
# ---------------------------------------------------------------------------


def _mlp_fused_kernel(x_ref, b_ref, *rest, num_layers: int, out_pads: Tuple[int, ...]):
    """All layers for one batch tile; intermediates never leave the chip.

    x_ref: (TM, in_pad0) bf16
    b_ref: (L, max_out_pad) f32 (packed biases)
    rest : (w0, ..., w_{L-1}, o_ref); w_li (in_pad, out_pad) bf16; o (TM, out_pad_last) f32
    """
    o_ref = rest[num_layers]
    b_all = b_ref[...]
    h = x_ref[...]  # bf16 MXU operand
    for li in range(num_layers):
        y = jnp.dot(h, rest[li][...], preferred_element_type=jnp.float32)
        y = y + b_all[li:li + 1, :out_pads[li]]  # (1, out) broadcast over rows, f32
        if li < num_layers - 1:
            h = jnp.maximum(y, 0.0).astype(jnp.bfloat16)
        else:
            h = y
    o_ref[...] = h.astype(o_ref.dtype)


def _fused_forward(x_p, prep: PreparedMLP, TM: int, vmem_ceiling: int,
                   single_buffer_params: bool):
    """Build & run the fused pallas_call. Returns None if it cannot fit VMEM."""
    L = len(prep.weights)
    B_pad = x_p.shape[0]

    const_kwargs = {}
    if single_buffer_params and hasattr(pl, "Buffered"):
        const_kwargs = dict(pipeline_mode=pl.Buffered(1))

    in_specs = [
        pl.BlockSpec((TM, prep.in_pads[0]), lambda i: (i, 0)),
        pl.BlockSpec(prep.biases.shape, lambda i: (0, 0), **const_kwargs),
    ]
    flat_in = [x_p, prep.biases]
    for wp in prep.weights:
        in_specs.append(pl.BlockSpec(wp.shape, lambda i: (0, 0), **const_kwargs))
        flat_in.append(wp)
    out_spec = pl.BlockSpec((TM, prep.out_pads[-1]), lambda i: (i, 0))

    # VMEM accounting: double-buffered streamed blocks, resident params
    # (x1 if single-buffered), two live activation tiles, scratch margin.
    param_bytes = sum(w.size * 2 for w in prep.weights) + prep.biases.size * 4
    param_bytes *= 1 if single_buffer_params else 2
    stream_bytes = 2 * TM * prep.in_pads[0] * 2 + 2 * TM * prep.out_pads[-1] * 4
    act_bytes = 2 * TM * max(prep.out_pads) * 4
    needed = param_bytes + stream_bytes + act_bytes + _SCRATCH_MARGIN
    if needed > vmem_ceiling:
        return None  # residency guard: caller uses the per-layer tiled fallback
    vmem_limit = min(max(needed, 8 * 1024 * 1024), vmem_ceiling)

    flops = sum(2 * B_pad * ip * op for ip, op in zip(prep.in_pads, prep.out_pads))
    bytes_accessed = (x_p.size * 2
                      + sum(w.size * 2 for w in prep.weights)
                      + prep.biases.size * 4
                      + B_pad * prep.out_pads[-1] * 4)

    kernel = functools.partial(_mlp_fused_kernel, num_layers=L, out_pads=prep.out_pads)
    return pl.pallas_call(
        kernel,
        out_shape=jax.ShapeDtypeStruct((B_pad, prep.out_pads[-1]), jnp.float32),
        grid_spec=pltpu.PrefetchScalarGridSpec(
            num_scalar_prefetch=0,
            grid=(B_pad // TM,),
            in_specs=in_specs,
            out_specs=out_spec,
        ),
        compiler_params=pltpu.CompilerParams(
            dimension_semantics=("parallel",),
            vmem_limit_bytes=vmem_limit,
        ),
        cost_estimate=pl.CostEstimate(
            flops=flops, transcendentals=0, bytes_accessed=bytes_accessed
        ),
    )(*flat_in)


# ---------------------------------------------------------------------------
# Fallback path: per-layer tiled matmul (used when resident weights don't fit).
# ---------------------------------------------------------------------------


def _pick_tile(total: int, candidates: Sequence[int]) -> int:
    for c in candidates:
        if c <= total and total % c == 0:
            return c
    return total


def _linear_kernel(x_ref, w_ref, b_ref, o_ref, acc_ref, *, apply_relu: bool):
    @pl.when(pl.program_id(2) == 0)
    def _():
        acc_ref[...] = jnp.zeros_like(acc_ref)

    acc_ref[...] += jnp.dot(x_ref[...], w_ref[...], preferred_element_type=jnp.float32)

    @pl.when(pl.program_id(2) == pl.num_programs(2) - 1)
    def _():
        y = acc_ref[...] + b_ref[...]
        if apply_relu:
            y = jnp.maximum(y, 0.0)
        o_ref[...] = y.astype(o_ref.dtype)


def _linear_pallas(x_p, w_p, b_row, *, apply_relu: bool, out_dtype, vmem_ceiling: int):
    """Tiled y = x @ w + b (optional ReLU); M/N/K grid with f32 accumulator."""
    M, K = x_p.shape
    K2, N = w_p.shape
    assert K == K2
    tm = _pick_tile(M, (256, 128, 64, 32, 16, 8))
    tn = _pick_tile(N, (512, 256, 128))
    tk = _pick_tile(K, (512, 256, 128))
    osz = jnp.dtype(out_dtype).itemsize
    needed = (2 * tm * tk * 2 + 2 * tk * tn * 2 + 2 * 8 * tn * 4
              + 2 * tm * tn * osz + tm * tn * 4 + _SCRATCH_MARGIN)
    vmem_limit = min(max(needed, 8 * 1024 * 1024), vmem_ceiling)

    kernel = functools.partial(_linear_kernel, apply_relu=apply_relu)
    return pl.pallas_call(
        kernel,
        out_shape=jax.ShapeDtypeStruct((M, N), out_dtype),
        grid_spec=pltpu.PrefetchScalarGridSpec(
            num_scalar_prefetch=0,
            grid=(M // tm, N // tn, K // tk),
            in_specs=[
                pl.BlockSpec((tm, tk), lambda i, j, k: (i, k)),
                pl.BlockSpec((tk, tn), lambda i, j, k: (k, j)),
                pl.BlockSpec((1, tn), lambda i, j, k: (0, j)),
            ],
            out_specs=pl.BlockSpec((tm, tn), lambda i, j, k: (i, j)),
            scratch_shapes=[pltpu.VMEM((tm, tn), jnp.float32)],
        ),
        compiler_params=pltpu.CompilerParams(
            dimension_semantics=("parallel", "parallel", "arbitrary"),
            vmem_limit_bytes=vmem_limit,
        ),
    )(x_p, w_p, b_row)


# ---------------------------------------------------------------------------
# Public forward.
# ---------------------------------------------------------------------------


def mlp_proj_forward(x, prep: PreparedMLP, *, tile_m: Optional[int] = None,
                     force_fallback: bool = False):
    """Forward pass of MLP_Proj. x: (B, E) -> (B, output_size) float32."""
    B, E = x.shape
    L = len(prep.weights)
    assert E == prep.in_sizes[0], "input feature mismatch"

    B8 = _round_up(B, 8)
    TM = min(tile_m if tile_m is not None else _default_tile_m(), B8)
    TM = max(8, _round_up(TM, 8))
    B_pad = _round_up(B8, TM)

    # Per-call input prep only: zero-pad + bf16 cast (zero pad columns
    # contribute exactly 0 to the matmul; padded rows are sliced off below).
    x_p = jnp.zeros((B_pad, prep.in_pads[0]), jnp.bfloat16)
    x_p = x_p.at[:B, :E].set(x.astype(jnp.bfloat16))

    vmem_ceiling = (_vmem_capacity_bytes() * 7) // 8  # leave Mosaic headroom

    out_p = None
    if not force_fallback:
        try:
            out_p = _fused_forward(x_p, prep, TM, vmem_ceiling,
                                   single_buffer_params=True)
        except Exception:
            out_p = None
        if out_p is None:
            try:
                out_p = _fused_forward(x_p, prep, TM, vmem_ceiling,
                                       single_buffer_params=False)
            except Exception:
                out_p = None

    if out_p is None:
        # Residency guard: weights too large to keep fully resident (or fused
        # path rejected) -> per-layer tiled matmuls through HBM.
        h = x_p
        for li in range(L):
            b_row = prep.biases[li:li + 1, :prep.out_pads[li]]
            last = li == L - 1
            h = _linear_pallas(
                h, prep.weights[li], b_row,
                apply_relu=not last,
                out_dtype=jnp.float32 if last else jnp.bfloat16,
                vmem_ceiling=vmem_ceiling,
            )
        out_p = h

    return out_p[:B, :prep.out_sizes[-1]]


# ---------------------------------------------------------------------------
# Parameter init mirroring nn.Linear defaults (uniform +/- 1/sqrt(fan_in)).
# ---------------------------------------------------------------------------


def init_mlp_proj_params(key, input_size, hidden_size, output_size, num_layers=1):
    assert num_layers >= 1, "[error] num_layers < 1"
    sizes = [input_size] + [hidden_size] * (num_layers - 1) + [output_size]
    params = []
    for i in range(num_layers):
        fan_in, fan_out = sizes[i], sizes[i + 1]
        key, kw, kb = jax.random.split(key, 3)
        bound = 1.0 / (fan_in ** 0.5)
        # stored as (in, out) — transpose of PyTorch's (out, in) weight layout
        w = jax.random.uniform(kw, (fan_in, fan_out), jnp.float32, -bound, bound)
        b = jax.random.uniform(kb, (1, fan_out), jnp.float32, -bound, bound)
        params.append((w, b))
    return params


if __name__ == "__main__":
    key = jax.random.PRNGKey(0)

    B = 8
    input_size, hidden_size, output_size = 32, 64, 16
    num_layers = 2  # Linear -> ReLU -> Linear

    key, kx, kp = jax.random.split(key, 3)
    x = jax.random.normal(kx, (B, input_size), jnp.float32)
    params = init_mlp_proj_params(kp, input_size, hidden_size, output_size, num_layers)

    prepared = prepare_mlp_proj_params(params)  # one-time pad + bf16 cast

    out = mlp_proj_forward(x, prepared)
    out = jax.block_until_ready(out)
    assert out.shape == (B, output_size)

    # Reference with matched arithmetic (bf16 operands, f32 accumulation).
    ref = x.astype(jnp.float32)
    for li, (w, b) in enumerate(params):
        ref = jnp.dot(
            ref.astype(jnp.bfloat16),
            w.astype(jnp.bfloat16),
            preferred_element_type=jnp.float32,
        ) + b.reshape(1, -1)
        if li < len(params) - 1:
            ref = jnp.maximum(ref, 0.0)
    assert jnp.allclose(out, ref, atol=1e-3, rtol=1e-3), "mismatch vs matched ref"

    # Loose check against the pure-f32 PyTorch-equivalent reference.
    ref32 = x.astype(jnp.float32)
    for li, (w, b) in enumerate(params):
        ref32 = ref32 @ w + b.reshape(1, -1)
        if li < len(params) - 1:
            ref32 = jnp.maximum(ref32, 0.0)
    assert jnp.allclose(out, ref32, atol=5e-2, rtol=5e-2), "mismatch vs f32 ref"

    # Exercise the residency-guard fallback (per-layer tiled matmuls) too.
    out_fb = jax.block_until_ready(mlp_proj_forward(x, prepared, force_fallback=True))
    assert out_fb.shape == (B, output_size)
    assert jnp.allclose(out_fb, ref, atol=1e-3, rtol=1e-3), "fallback mismatch"

    print("KERNEL_OK")
</pallas_src>

<mosaic_0001>
module attributes {stable_mosaic.version = 11 : i64} {
  func.func @_mlp_fused_kernel(%arg0: i32, %arg1: memref<8x128xbf16, #tpu.memory_space<vmem>>, %arg2: memref<2x128xf32, #tpu.memory_space<vmem>>, %arg3: memref<128x128xbf16, #tpu.memory_space<vmem>>, %arg4: memref<128x128xbf16, #tpu.memory_space<vmem>>, %arg5: memref<8x128xf32, #tpu.memory_space<vmem>>) attributes {dimension_semantics = [#tpu.dimension_semantics<parallel>], iteration_bounds = array<i64: 1>, scalar_prefetch = 0 : i64, scratch_operands = 0 : i64, tpu.core_type = #tpu.core_type<tc>, window_params = [{transform_indices = @transform_0, window_bounds = array<i64: 8, 128>}, {pipeline_mode = #tpu.pipeline_mode<synchronous>, transform_indices = @transform_1, window_bounds = array<i64: 2, 128>}, {pipeline_mode = #tpu.pipeline_mode<synchronous>, transform_indices = @transform_2, window_bounds = array<i64: 128, 128>}, {pipeline_mode = #tpu.pipeline_mode<synchronous>, transform_indices = @transform_3, window_bounds = array<i64: 128, 128>}, {transform_indices = @transform_4, window_bounds = array<i64: 8, 128>}]} {
    %c0 = arith.constant 0 : index
    %c0_0 = arith.constant 0 : index
    %0 = vector.load %arg2[%c0, %c0_0] : memref<2x128xf32, #tpu.memory_space<vmem>>, vector<2x128xf32>
    %c0_1 = arith.constant 0 : index
    %c0_2 = arith.constant 0 : index
    %1 = vector.load %arg1[%c0_1, %c0_2] : memref<8x128xbf16, #tpu.memory_space<vmem>>, vector<8x128xbf16>
    %c0_3 = arith.constant 0 : index
    %c0_4 = arith.constant 0 : index
    %2 = vector.load %arg3[%c0_3, %c0_4] : memref<128x128xbf16, #tpu.memory_space<vmem>>, vector<128x128xbf16>
    %cst = arith.constant dense<0.000000e+00> : vector<8x128xf32>
    %3 = tpu.matmul %1, %2, %cst {dimension_numbers = #tpu.dot_dimension_numbers<[1], [0], [0], [1], [0, 0, 1, 1], [], []>} : vector<8x128xbf16>, vector<128x128xbf16>, vector<8x128xf32> -> vector<8x128xf32>
    %4 = vector.extract_strided_slice %0 {offsets = [0, 0], sizes = [1, 128], strides = [1, 1]} : vector<2x128xf32> to vector<1x128xf32>
    %5 = vector.broadcast %4 : vector<1x128xf32> to vector<8x128xf32>
    %6 = arith.addf %3, %5 : vector<8x128xf32>
    %cst_5 = arith.constant 0.000000e+00 : f32
    %7 = vector.broadcast %cst_5 : f32 to vector<8x128xf32>
    %8 = arith.maximumf %6, %7 : vector<8x128xf32>
    %9 = arith.truncf %8 : vector<8x128xf32> to vector<8x128xbf16>
    %c0_6 = arith.constant 0 : index
    %c0_7 = arith.constant 0 : index
    %10 = vector.load %arg4[%c0_6, %c0_7] : memref<128x128xbf16, #tpu.memory_space<vmem>>, vector<128x128xbf16>
    %cst_8 = arith.constant dense<0.000000e+00> : vector<8x128xf32>
    %11 = tpu.matmul %9, %10, %cst_8 {dimension_numbers = #tpu.dot_dimension_numbers<[1], [0], [0], [1], [0, 0, 1, 1], [], []>} : vector<8x128xbf16>, vector<128x128xbf16>, vector<8x128xf32> -> vector<8x128xf32>
    %12 = vector.extract_strided_slice %0 {offsets = [1, 0], sizes = [1, 128], strides = [1, 1]} : vector<2x128xf32> to vector<1x128xf32>
    %13 = vector.broadcast %12 : vector<1x128xf32> to vector<8x128xf32>
    %14 = arith.addf %11, %13 : vector<8x128xf32>
    %c0_9 = arith.constant 0 : index
    %c0_10 = arith.constant 0 : index
    %15 = vector.load %arg5[%c0_9, %c0_10] : memref<8x128xf32, #tpu.memory_space<vmem>>, vector<8x128xf32>
    tpu.vector_store %arg5[%c0_9, %c0_10], %14 {strides = array<i32>} : memref<8x128xf32, #tpu.memory_space<vmem>>, vector<8x128xf32>,
    return
  }
  func.func @transform_0(%arg0: i32) -> (i32, i32) {
    %c0_i32 = arith.constant 0 : i32
    %c0_i32_0 = arith.constant 0 : i32
    return %arg0, %c0_i32 : i32, i32
  }
  func.func @transform_1(%arg0: i32) -> (i32, i32) {
    %c0_i32 = arith.constant 0 : i32
    %c0_i32_0 = arith.constant 0 : i32
    %c0_i32_1 = arith.constant 0 : i32
    return %c0_i32, %c0_i32_0 : i32, i32
  }
  func.func @transform_2(%arg0: i32) -> (i32, i32) {
    %c0_i32 = arith.constant 0 : i32
    %c0_i32_0 = arith.constant 0 : i32
    %c0_i32_1 = arith.constant 0 : i32
    return %c0_i32, %c0_i32_0 : i32, i32
  }
  func.func @transform_3(%arg0: i32) -> (i32, i32) {
    %c0_i32 = arith.constant 0 : i32
    %c0_i32_0 = arith.constant 0 : i32
    %c0_i32_1 = arith.constant 0 : i32
    return %c0_i32, %c0_i32_0 : i32, i32
  }
  func.func @transform_4(%arg0: i32) -> (i32, i32) {
    %c0_i32 = arith.constant 0 : i32
    %c0_i32_0 = arith.constant 0 : i32
    return %arg0, %c0_i32 : i32, i32
  }
}

module attributes {stable_mosaic.version = 11 : i64} {
  func.func @_mlp_fused_kernel(%arg0: i32, %arg1: memref<8x128xbf16, #tpu.memory_space<vmem>>, %arg2: memref<2x128xf32, #tpu.memory_space<vmem>>, %arg3: memref<128x128xbf16, #tpu.memory_space<vmem>>, %arg4: memref<128x128xbf16, #tpu.memory_space<vmem>>, %arg5: memref<8x128xf32, #tpu.memory_space<vmem>>) attributes {dimension_semantics = [#tpu.dimension_semantics<parallel>], iteration_bounds = array<i64: 1>, scalar_prefetch = 0 : i64, scratch_operands = 0 : i64, tpu.core_type = #tpu.core_type<tc>, window_params = [{transform_indices = @transform_0, window_bounds = array<i64: 8, 128>}, {pipeline_mode = #tpu.pipeline_mode<synchronous>, transform_indices = @transform_1, window_bounds = array<i64: 2, 128>}, {pipeline_mode = #tpu.pipeline_mode<synchronous>, transform_indices = @transform_2, window_bounds = array<i64: 128, 128>}, {pipeline_mode = #tpu.pipeline_mode<synchronous>, transform_indices = @transform_3, window_bounds = array<i64: 128, 128>}, {transform_indices = @transform_4, window_bounds = array<i64: 8, 128>}]} {
    %c0 = arith.constant 0 : index
    %c0_0 = arith.constant 0 : index
    %0 = vector.load %arg2[%c0, %c0_0] : memref<2x128xf32, #tpu.memory_space<vmem>>, vector<2x128xf32>
    %c0_1 = arith.constant 0 : index
    %c0_2 = arith.constant 0 : index
    %1 = vector.load %arg1[%c0_1, %c0_2] : memref<8x128xbf16, #tpu.memory_space<vmem>>, vector<8x128xbf16>
    %c0_3 = arith.constant 0 : index
    %c0_4 = arith.constant 0 : index
    %2 = vector.load %arg3[%c0_3, %c0_4] : memref<128x128xbf16, #tpu.memory_space<vmem>>, vector<128x128xbf16>
    %cst = arith.constant dense<0.000000e+00> : vector<8x128xf32>
    %3 = tpu.matmul %1, %2, %cst {dimension_numbers = #tpu.dot_dimension_numbers<[1], [0], [0], [1], [0, 0, 1, 1], [], []>} : vector<8x128xbf16>, vector<128x128xbf16>, vector<8x128xf32> -> vector<8x128xf32>
    %4 = vector.extract_strided_slice %0 {offsets = [0, 0], sizes = [1, 128], strides = [1, 1]} : vector<2x128xf32> to vector<1x128xf32>
    %5 = vector.broadcast %4 : vector<1x128xf32> to vector<8x128xf32>
    %6 = arith.addf %3, %5 : vector<8x128xf32>
    %cst_5 = arith.constant 0.000000e+00 : f32
    %7 = vector.broadcast %cst_5 : f32 to vector<8x128xf32>
    %8 = arith.maximumf %6, %7 : vector<8x128xf32>
    %9 = arith.truncf %8 : vector<8x128xf32> to vector<8x128xbf16>
    %c0_6 = arith.constant 0 : index
    %c0_7 = arith.constant 0 : index
    %10 = vector.load %arg4[%c0_6, %c0_7] : memref<128x128xbf16, #tpu.memory_space<vmem>>, vector<128x128xbf16>
    %cst_8 = arith.constant dense<0.000000e+00> : vector<8x128xf32>
    %11 = tpu.matmul %9, %10, %cst_8 {dimension_numbers = #tpu.dot_dimension_numbers<[1], [0], [0], [1], [0, 0, 1, 1], [], []>} : vector<8x128xbf16>, vector<128x128xbf16>, vector<8x128xf32> -> vector<8x128xf32>
    %12 = vector.extract_strided_slice %0 {offsets = [1, 0], sizes = [1, 128], strides = [1, 1]} : vector<2x128xf32> to vector<1x128xf32>
    %13 = vector.broadcast %12 : vector<1x128xf32> to vector<8x128xf32>
    %14 = arith.addf %11, %13 : vector<8x128xf32>
    %c0_9 = arith.constant 0 : index
    %c0_10 = arith.constant 0 : index
    %15 = vector.load %arg5[%c0_9, %c0_10] : memref<8x128xf32, #tpu.memory_space<vmem>>, vector<8x128xf32>
    tpu.vector_store %arg5[%c0_9, %c0_10], %14 {strides = array<i32>} : memref<8x128xf32, #tpu.memory_space<vmem>>, vector<8x128xf32>,
    return
  }
  func.func @transform_0(%arg0: i32) -> (i32, i32) {
    %c0_i32 = arith.constant 0 : i32
    %c0_i32_0 = arith.constant 0 : i32
    return %arg0, %c0_i32 : i32, i32
  }
  func.func @transform_1(%arg0: i32) -> (i32, i32) {
    %c0_i32 = arith.constant 0 : i32
    %c0_i32_0 = arith.constant 0 : i32
    %c0_i32_1 = arith.constant 0 : i32
    return %c0_i32, %c0_i32_0 : i32, i32
  }
  func.func @transform_2(%arg0: i32) -> (i32, i32) {
    %c0_i32 = arith.constant 0 : i32
    %c0_i32_0 = arith.constant 0 : i32
    %c0_i32_1 = arith.constant 0 : i32
    return %c0_i32, %c0_i32_0 : i32, i32
  }
  func.func @transform_3(%arg0: i32) -> (i32, i32) {
    %c0_i32 = arith.constant 0 : i32
    %c0_i32_0 = arith.constant 0 : i32
    %c0_i32_1 = arith.constant 0 : i32
    return %c0_i32, %c0_i32_0 : i32, i32
  }
  func.func @transform_4(%arg0: i32) -> (i32, i32) {
    %c0_i32 = arith.constant 0 : i32
    %c0_i32_0 = arith.constant 0 : i32
    return %arg0, %c0_i32 : i32, i32
  }
}

module attributes {stable_mosaic.version = 11 : i64} {
  func.func @_linear_kernel(%arg0: i32, %arg1: i32, %arg2: i32, %arg3: memref<8x128xbf16, #tpu.memory_space<vmem>>, %arg4: memref<128x128xbf16, #tpu.memory_space<vmem>>, %arg5: memref<1x128xf32, #tpu.memory_space<vmem>>, %arg6: memref<8x128xbf16, #tpu.memory_space<vmem>>, %arg7: memref<8x128xf32, #tpu.memory_space<vmem>>) attributes {dimension_semantics = [#tpu.dimension_semantics<parallel>, #tpu.dimension_semantics<parallel>, #tpu.dimension_semantics<arbitrary>], iteration_bounds = array<i64: 1, 1, 1>, scalar_prefetch = 0 : i64, scratch_operands = 1 : i64, tpu.core_type = #tpu.core_type<tc>, window_params = [{transform_indices = @transform_0, window_bounds = array<i64: 8, 128>}, {transform_indices = @transform_1, window_bounds = array<i64: 128, 128>}, {transform_indices = @transform_2, window_bounds = array<i64: 1, 128>}, {transform_indices = @transform_3, window_bounds = array<i64: 8, 128>}]} {
    %c0_i32 = arith.constant 0 : i32
    %0 = arith.cmpi eq, %arg2, %c0_i32 : i32
    %1 = arith.extui %0 : i1 to i32
    %c0_i32_0 = arith.constant 0 : i32
    %2 = arith.cmpi ne, %1, %c0_i32_0 : i32
    scf.if %2 {
      %cst_10 = arith.constant 0.000000e+00 : f32
      %12 = vector.broadcast %cst_10 : f32 to vector<8x128xf32>
      %c0_11 = arith.constant 0 : index
      %c0_12 = arith.constant 0 : index
      %13 = vector.load %arg7[%c0_11, %c0_12] : memref<8x128xf32, #tpu.memory_space<vmem>>, vector<8x128xf32>
      tpu.vector_store %arg7[%c0_11, %c0_12], %12 {strides = array<i32>} : memref<8x128xf32, #tpu.memory_space<vmem>>, vector<8x128xf32>,
    } else {
    }
    %c0 = arith.constant 0 : index
    %c0_1 = arith.constant 0 : index
    %3 = vector.load %arg7[%c0, %c0_1] : memref<8x128xf32, #tpu.memory_space<vmem>>, vector<8x128xf32>
    %c0_2 = arith.constant 0 : index
    %c0_3 = arith.constant 0 : index
    %4 = vector.load %arg3[%c0_2, %c0_3] : memref<8x128xbf16, #tpu.memory_space<vmem>>, vector<8x128xbf16>
    %c0_4 = arith.constant 0 : index
    %c0_5 = arith.constant 0 : index
    %5 = vector.load %arg4[%c0_4, %c0_5] : memref<128x128xbf16, #tpu.memory_space<vmem>>, vector<128x128xbf16>
    %cst = arith.constant dense<0.000000e+00> : vector<8x128xf32>
    %6 = tpu.matmul %4, %5, %cst {dimension_numbers = #tpu.dot_dimension_numbers<[1], [0], [0], [1], [0, 0, 1, 1], [], []>} : vector<8x128xbf16>, vector<128x128xbf16>, vector<8x128xf32> -> vector<8x128xf32>
    %7 = arith.addf %3, %6 : vector<8x128xf32>
    %c0_6 = arith.constant 0 : index
    %c0_7 = arith.constant 0 : index
    %8 = vector.load %arg7[%c0_6, %c0_7] : memref<8x128xf32, #tpu.memory_space<vmem>>, vector<8x128xf32>
    tpu.vector_store %arg7[%c0_6, %c0_7], %7 {strides = array<i32>} : memref<8x128xf32, #tpu.memory_space<vmem>>, vector<8x128xf32>,
    %c0_i32_8 = arith.constant 0 : i32
    %9 = arith.cmpi eq, %arg2, %c0_i32_8 : i32
    %10 = arith.extui %9 : i1 to i32
    %c0_i32_9 = arith.constant 0 : i32
    %11 = arith.cmpi ne, %10, %c0_i32_9 : i32
    scf.if %11 {
      %c0_10 = arith.constant 0 : index
      %c0_11 = arith.constant 0 : index
      %12 = vector.load %arg7[%c0_10, %c0_11] : memref<8x128xf32, #tpu.memory_space<vmem>>, vector<8x128xf32>
      %c0_12 = arith.constant 0 : index
      %c0_13 = arith.constant 0 : index
      %13 = vector.load %arg5[%c0_12, %c0_13] : memref<1x128xf32, #tpu.memory_space<vmem>>, vector<1x128xf32>
      %14 = vector.broadcast %13 : vector<1x128xf32> to vector<8x128xf32>
      %15 = arith.addf %12, %14 : vector<8x128xf32>
      %cst_14 = arith.constant 0.000000e+00 : f32
      %16 = vector.broadcast %cst_14 : f32 to vector<8x128xf32>
      %17 = arith.maximumf %15, %16 : vector<8x128xf32>
      %18 = arith.truncf %17 : vector<8x128xf32> to vector<8x128xbf16>
      %c0_15 = arith.constant 0 : index
      %c0_16 = arith.constant 0 : index
      %19 = vector.load %arg6[%c0_15, %c0_16] : memref<8x128xbf16, #tpu.memory_space<vmem>>, vector<8x128xbf16>
      tpu.vector_store %arg6[%c0_15, %c0_16], %18 {strides = array<i32>} : memref<8x128xbf16, #tpu.memory_space<vmem>>, vector<8x128xbf16>,
    } else {
    }
    return
  }
  func.func @transform_0(%arg0: i32, %arg1: i32, %arg2: i32) -> (i32, i32) {
    %c0_i32 = arith.constant 0 : i32
    return %arg0, %arg2 : i32, i32
  }
  func.func @transform_1(%arg0: i32, %arg1: i32, %arg2: i32) -> (i32, i32) {
    %c0_i32 = arith.constant 0 : i32
    return %arg2, %arg1 : i32, i32
  }
  func.func @transform_2(%arg0: i32, %arg1: i32, %arg2: i32) -> (i32, i32) {
    %c0_i32 = arith.constant 0 : i32
    %c0_i32_0 = arith.constant 0 : i32
    return %c0_i32, %arg1 : i32, i32
  }
  func.func @transform_3(%arg0: i32, %arg1: i32, %arg2: i32) -> (i32, i32) {
    %c0_i32 = arith.constant 0 : i32
    return %arg0, %arg1 : i32, i32
  }
}

</mosaic_0001>

<bundles_post_ra>
// kernel: tpu_custom_call.1
= control target key start
LH: loop header
LB: loop body
LE: loop exit
PB: predicated region body
PF: predicated region fallthrough
CT: control target
= control target key end

     0   :  { %9 = vsyncpa [#allocation3], 0  ;;  %s577_s0 = inlined_call_operand.hbm [shape: bf16[8,128], index: 0, kind: input, shape index: {}]   ;;  %s578_s1 = inlined_call_operand.vmem [shape: f32[2,128], index: 1, kind: input, shape index: {}]   ;;  %s579_s2 = inlined_call_operand.hbm [shape: bf16[128,128], index: 2, kind: input, shape index: {}]   ;;  %s580_s3 = inlined_call_operand.hbm [shape: bf16[128,128], index: 3, kind: input, shape index: {}]   ;;  %s581_s4 = inlined_call_operand.hbm [shape: f32[8,128], index: 4, kind: output, shape index: {}]  }
   0x1   :  { %10 = vsyncpa [#allocation6], 0 }
   0x2   :  { %11 = vsyncpa [#allocation4], 0  ;;  %s487_s15 = smov [#allocation5]   ;;  %s393_s19 = scalar_lea.hbm %s579_s2, 1024 }
   0x3   :  { %s29_s16 = sshll.u32 %s487_s15, 4  ;;  %p394_p0 = scmp.ne.s32.totalorder %s579_s2, %s393_s19  ;;  %s30_s16 = int_to_ptr.vmem [resolvable:$true] %s29_s16 }
   0x4   :  { %p397_p1 = scmp.lt.u32.totalorder %s393_s19, %s579_s2 }
   0x6   :  { %p399_p2 = pnand %p397_p1, %p394_p0 }
   0x8   :  { %402 = shalt.err (!%p399_p2)
}
   0x9   :  { %s403_s24 = scalar_lea.vmem %s30_s16, 1024  ;;  %p408_p4 = scmp.lt.s32.totalorder %s30_s16, %s30_s16 }
   0xa   :  { %p404_p3 = scmp.ne.s32.totalorder %s30_s16, %s403_s24  ;;  %p409_p5 = scmp.lt.s32.totalorder %s403_s24, %s403_s24 }
   0xc   :  { %p410_p6 = por %p409_p5, %p408_p4 }
   0xe   :  { %p411_p7 = pnand %p410_p6, %p404_p3 }
  0x10   :  { %414 = shalt.err (!%p411_p7)
}
  0x11   :  { %s488_s25 = smov 64   ;;  %s489_s26 = smov 4  }
  0x12   :  { %35 = dma.hbm_to_vmem [thread:$0]  %s579_s2, 1024, %s30_s16, [#allocation6], %s488_s25, %s488_s25, %s489_s26  }
  0x13   :  { %s490_s29 = smov [#allocation2]   ;;  %s491_s5 = smov [#allocation7]  }
  0x14   :  { %s18_s30 = sshll.u32 %s490_s29, 4  ;;  %s41_s6 = sshll.u32 %s491_s5, 4  ;;  %s19_s30 = int_to_ptr.vmem [resolvable:$true] %s18_s30  ;;  %s42_s6 = int_to_ptr.vmem [resolvable:$true] %s41_s6 }
  0x15   :  { %s415_s9 = scalar_lea.hbm %s577_s0, 64 }
  0x16   :  { %p416_p8 = scmp.ne.s32.totalorder %s577_s0, %s415_s9  ;;  %p419_p9 = scmp.lt.u32.totalorder %s415_s9, %s577_s0 }
  0x18   :  { %p421_p10 = pnand %p419_p9, %p416_p8 }
  0x1a   :  { %424 = shalt.err (!%p421_p10)
}
  0x1b   :  { %s425_s2 = scalar_lea.vmem %s19_s30, 64  ;;  %p430_p12 = scmp.lt.s32.totalorder %s19_s30, %s19_s30 }
  0x1c   :  { %p426_p11 = scmp.ne.s32.totalorder %s19_s30, %s425_s2  ;;  %p431_p13 = scmp.lt.s32.totalorder %s425_s2, %s425_s2 }
  0x1e   :  { %p432_p0 = por %p431_p13, %p430_p12 }
  0x20   :  { %p433_p1 = pnand %p432_p0, %p426_p11 }
  0x22   :  { %436 = shalt.err (!%p433_p1)
}
  0x23   :  { %21 = dma.hbm_to_vmem [thread:$0]  %s577_s0, 64, %s19_s30, [#allocation3]  }
  0x24   :  { %s437_s18 = scalar_lea.hbm %s580_s3, 1024 }
  0x25   :  { %p438_p2 = scmp.ne.s32.totalorder %s580_s3, %s437_s18  ;;  %p441_p3 = scmp.lt.u32.totalorder %s437_s18, %s580_s3 }
  0x27   :  { %p443_p4 = pnand %p441_p3, %p438_p2 }
  0x29   :  { %446 = shalt.err (!%p443_p4)
}
  0x2a   :  { %s447_s23 = scalar_lea.vmem %s42_s6, 1024  ;;  %p452_p6 = scmp.lt.s32.totalorder %s42_s6, %s42_s6 }
  0x2b   :  { %p448_p5 = scmp.ne.s32.totalorder %s42_s6, %s447_s23  ;;  %p453_p7 = scmp.lt.s32.totalorder %s447_s23, %s447_s23 }
  0x2d   :  { %p454_p8 = por %p453_p7, %p452_p6 }
  0x2f   :  { %p455_p9 = pnand %p454_p8, %p448_p5 }
  0x31   :  { %458 = shalt.err (!%p455_p9)
}
  0x32   :  { %47 = dma.hbm_to_vmem [thread:$0]  %s580_s3, 1024, %s42_s6, [#allocation6], %s488_s25, %s488_s25, %s489_s26  }
  0x33   :  { %481 = dma.done.wait [#allocation3], 64  }
  0x34   :  { %482 = vsyncadd [#allocation3], 4294967232 }
  0x35   :  { %483 = dma.done.wait [#allocation6], 2048  }
  0x36   :  { %484 = vsyncadd [#allocation6], 4294965248  ;;  %v492_v0 = vmov 0.0   ;;  %vm493_vm0 = vmmov 0   ;;  %v377_v1 = vld [vmem:[#allocation5] sm:$0xff]   ;;  %v378_v2 = vld [vmem:[#allocation5 + $0x8] sm:$0xff]   ;;  %v76_v18 = vlaneseq }
  0x37   :  { %329 = vmatprep.subr.bf16.mxu0 %v492_v0  ;;  %345 = vmatprep.mubr.msk.bf16.mxu0 %vm493_vm0, %v492_v0  ;;  %v379_v3 = vld [vmem:[#allocation5 + $0x10] sm:$0xff]   ;;  %v385_v4 = vld [vmem:[#allocation7] sm:$0xff]   ;;  %v380_v5 = vld [vmem:[#allocation5 + $0x18] sm:$0xff]   ;;  %s494_s26 = smov [#allocation8]  }
  0x38   :  { %349 = vmatprep.subr.bf16.mxu1 %v492_v0  ;;  %365 = vmatprep.mubr.msk.bf16.mxu1 %vm493_vm0, %v492_v0  ;;  %v386_v6 = vld [vmem:[#allocation7 + $0x8] sm:$0xff]   ;;  %v381_v7 = vld [vmem:[#allocation5 + $0x20] sm:$0xff]   ;;  %v387_v8 = vld [vmem:[#allocation7 + $0x10] sm:$0xff]   ;;  %v77_v19 = vshrl.u32 %v76_v18, 7  ;;  %s285_s27 = sshll.u32 %s494_s26, 4  ;;  %s286_s27 = int_to_ptr.vmem [resolvable:$true] %s285_s27 }
  0x39   :  { %330 = vmatpush3.bf16.msra.mxu0 %v377_v1  ;;  %350 = vmatpush3.bf16.msra.mxu1 %v385_v4  ;;  %v382_v9 = vld [vmem:[#allocation5 + $0x28] sm:$0xff]   ;;  %v388_v10 = vld [vmem:[#allocation7 + $0x18] sm:$0xff]   ;;  %v383_v11 = vld [vmem:[#allocation5 + $0x30] sm:$0xff]   ;;  %p464_p11 = scmp.lt.s32.totalorder %s286_s27, %s286_s27 }
  0x3a   :  { %331 = vmatprep.subr.bf16.mxu0 %v492_v0  ;;  %351 = vmatprep.subr.bf16.mxu1 %v492_v0  ;;  %v389_v12 = vld [vmem:[#allocation7 + $0x20] sm:$0xff]   ;;  %v384_v13 = vld [vmem:[#allocation5 + $0x38] sm:$0xff]   ;;  %v390_v14 = vld [vmem:[#allocation7 + $0x28] sm:$0xff]   ;;  %v78_v20 = vsub.s32 0, %v77_v19  ;;  %v188_v30 = vsub.s32 1, %v77_v19 }
  0x3b   :  { %v59_v15 = vld [vmem:[#allocation2] sm:$0xf]  ;;  %v391_v16 = vld [vmem:[#allocation7 + $0x30] sm:$0xff]  }
  0x3c   :  { %v392_v17 = vld [vmem:[#allocation7 + $0x38] sm:$0xff]  }
  0x3d   :  { %332 = vmatpush3.bf16.msra.mxu0 %v378_v2  ;;  %352 = vmatpush3.bf16.msra.mxu1 %v386_v6  ;;  %v58_v21 = vld [vmem:[%s578_s1] sm:$0x3]  ;;  %s459_s1 = scalar_lea.vmem %s286_s27, 128 }
  0x3e   :  { %333 = vmatprep.subr.bf16.mxu0 %v492_v0  ;;  %353 = vmatprep.subr.bf16.mxu1 %v492_v0  ;;  %v79_v22 = vrot.slane %v58_v21, %v78_v20  ;;  %v189_v31 = vrot.slane %v58_v21, %v188_v30  ;;  %p460_p10 = scmp.ne.s32.totalorder %s286_s27, %s459_s1  ;;  %p465_p12 = scmp.lt.s32.totalorder %s459_s1, %s459_s1 }
  0x40   :  { %p466_p13 = por %p465_p12, %p464_p11 }
  0x41   :  { %334 = vmatpush3.bf16.msra.mxu0 %v379_v3  ;;  %354 = vmatpush3.bf16.msra.mxu1 %v387_v8 }
  0x42   :  { %335 = vmatprep.subr.bf16.mxu0 %v492_v0  ;;  %355 = vmatprep.subr.bf16.mxu1 %v492_v0  ;;  %p467_p0 = pnand %p466_p13, %p460_p10 }
  0x45   :  { %336 = vmatpush3.bf16.msra.mxu0 %v380_v5  ;;  %356 = vmatpush3.bf16.msra.mxu1 %v388_v10 }
  0x46   :  { %337 = vmatprep.subr.bf16.mxu0 %v492_v0  ;;  %357 = vmatprep.subr.bf16.mxu1 %v492_v0 }
  0x49   :  { %338 = vmatpush3.bf16.msra.mxu0 %v381_v7  ;;  %358 = vmatpush3.bf16.msra.mxu1 %v389_v12 }
  0x4a   :  { %339 = vmatprep.subr.bf16.mxu0 %v492_v0  ;;  %359 = vmatprep.subr.bf16.mxu1 %v492_v0 }
  0x4d   :  { %340 = vmatpush3.bf16.msra.mxu0 %v382_v9  ;;  %360 = vmatpush3.bf16.msra.mxu1 %v390_v14 }
  0x4e   :  { %341 = vmatprep.subr.bf16.mxu0 %v492_v0  ;;  %361 = vmatprep.subr.bf16.mxu1 %v492_v0 }
  0x51   :  { %342 = vmatpush3.bf16.msra.mxu0 %v383_v11  ;;  %362 = vmatpush3.bf16.msra.mxu1 %v391_v16 }
  0x52   :  { %343 = vmatprep.subr.bf16.mxu0 %v492_v0  ;;  %363 = vmatprep.subr.bf16.mxu1 %v492_v0 }
  0x55   :  { %344 = vmatpush3.bf16.msra.mxu0 %v384_v13  ;;  %364 = vmatpush3.bf16.msra.mxu1 %v392_v17 }
  0x58   :  { %346 = vmatmul.mubr.bf16.vlgmr.msra.gmra.mrb[0].mxu0 %v59_v15 }
 0x12b   :  { %v162_v23 = vpop.f32.mrb[0].mxu0 }
 0x12c   :  { %v163_v24 = vadd.f32 %v162_v23, %v79_v22  ;;  %v347_v25 = vpop.f32.mrb[1].mxu0 }
 0x12d   :  { %v165_v26 = vpop.f32.mrb[2].mxu0 }
 0x12e   :  { %v168_v27 = vmax.f32 %v163_v24, 0.0  ;;  %v348_v28 = vpop.f32.mrb[3].mxu0 }
 0x130   :  { %v169_v29 = vpack.c.bf16 %v168_v27, %v168_v27 }
 0x132   :  { %366 = vmatmul.mubr.bf16.vlgmr.msra.gmra.mrb[0].mxu1 %v169_v29 }
 0x205   :  { %v272_v32 = vpop.f32.mrb[0].mxu1 }
 0x206   :  { %v273_v33 = vadd.f32 %v272_v32, %v189_v31  ;;  %v367_v34 = vpop.f32.mrb[1].mxu1 }
 0x207   :  { %v275_v35 = vpop.f32.mrb[2].mxu1 }
 0x208   :  { %278 = vst [vmem:[#allocation8] sm:$0xff] %v273_v33  ;;  %v368_v36 = vpop.f32.mrb[3].mxu1 }
 0x209   :  { %470 = shalt.err (!%p467_p0)
}
 0x20a   :  { %s471_s30 = scalar_lea.hbm %s581_s4, 128 }
 0x20b   :  { %p472_p1 = scmp.ne.s32.totalorder %s581_s4, %s471_s30  ;;  %p475_p2 = scmp.lt.u32.totalorder %s471_s30, %s581_s4 }
 0x20d   :  { %p477_p3 = pnand %p475_p2, %p472_p1 }
 0x20f   :  { %480 = shalt.err (!%p477_p3)
}
 0x210   :  { %288 = dma.vmem_to_hbm [thread:$0]  %s286_s27, 128, %s581_s4, [#allocation4]  }
 0x211   :  { %485 = dma.done.wait [#allocation4], 128  }
 0x212   :  { %486 = vsyncadd [#allocation4], 4294967168 }
 0x213   :  { %292 = vsyncpa [#allocation3], 1 }
 0x214   :  { %293 = vsyncpa [#allocation6], 1 }
 0x215   :  { %294 = vsyncpa [#allocation4], 1 }

// kernel: tpu_custom_call.1
= control target key start
LH: loop header
LB: loop body
LE: loop exit
PB: predicated region body
PF: predicated region fallthrough
CT: control target
= control target key end

     0   :  { %9 = vsyncpa [#allocation3], 0  ;;  %s577_s0 = inlined_call_operand.hbm [shape: bf16[8,128], index: 0, kind: input, shape index: {}]   ;;  %s578_s1 = inlined_call_operand.vmem [shape: f32[2,128], index: 1, kind: input, shape index: {}]   ;;  %s579_s2 = inlined_call_operand.hbm [shape: bf16[128,128], index: 2, kind: input, shape index: {}]   ;;  %s580_s3 = inlined_call_operand.hbm [shape: bf16[128,128], index: 3, kind: input, shape index: {}]   ;;  %s581_s4 = inlined_call_operand.hbm [shape: f32[8,128], index: 4, kind: output, shape index: {}]  }
   0x1   :  { %10 = vsyncpa [#allocation6], 0 }
   0x2   :  { %11 = vsyncpa [#allocation4], 0  ;;  %s487_s15 = smov [#allocation5]   ;;  %s393_s19 = scalar_lea.hbm %s579_s2, 1024 }
   0x3   :  { %s29_s16 = sshll.u32 %s487_s15, 4  ;;  %p394_p0 = scmp.ne.s32.totalorder %s579_s2, %s393_s19  ;;  %s30_s16 = int_to_ptr.vmem [resolvable:$true] %s29_s16 }
   0x4   :  { %p397_p1 = scmp.lt.u32.totalorder %s393_s19, %s579_s2 }
   0x6   :  { %p399_p2 = pnand %p397_p1, %p394_p0 }
   0x8   :  { %402 = shalt.err (!%p399_p2)
}
   0x9   :  { %s403_s24 = scalar_lea.vmem %s30_s16, 1024  ;;  %p408_p4 = scmp.lt.s32.totalorder %s30_s16, %s30_s16 }
   0xa   :  { %p404_p3 = scmp.ne.s32.totalorder %s30_s16, %s403_s24  ;;  %p409_p5 = scmp.lt.s32.totalorder %s403_s24, %s403_s24 }
   0xc   :  { %p410_p6 = por %p409_p5, %p408_p4 }
   0xe   :  { %p411_p7 = pnand %p410_p6, %p404_p3 }
  0x10   :  { %414 = shalt.err (!%p411_p7)
}
  0x11   :  { %s488_s25 = smov 64   ;;  %s489_s26 = smov 4  }
  0x12   :  { %35 = dma.hbm_to_vmem [thread:$0]  %s579_s2, 1024, %s30_s16, [#allocation6], %s488_s25, %s488_s25, %s489_s26  }
  0x13   :  { %s490_s29 = smov [#allocation2]   ;;  %s491_s5 = smov [#allocation7]  }
  0x14   :  { %s18_s30 = sshll.u32 %s490_s29, 4  ;;  %s41_s6 = sshll.u32 %s491_s5, 4  ;;  %s19_s30 = int_to_ptr.vmem [resolvable:$true] %s18_s30  ;;  %s42_s6 = int_to_ptr.vmem [resolvable:$true] %s41_s6 }
  0x15   :  { %s415_s9 = scalar_lea.hbm %s577_s0, 64 }
  0x16   :  { %p416_p8 = scmp.ne.s32.totalorder %s577_s0, %s415_s9  ;;  %p419_p9 = scmp.lt.u32.totalorder %s415_s9, %s577_s0 }
  0x18   :  { %p421_p10 = pnand %p419_p9, %p416_p8 }
  0x1a   :  { %424 = shalt.err (!%p421_p10)
}
  0x1b   :  { %s425_s2 = scalar_lea.vmem %s19_s30, 64  ;;  %p430_p12 = scmp.lt.s32.totalorder %s19_s30, %s19_s30 }
  0x1c   :  { %p426_p11 = scmp.ne.s32.totalorder %s19_s30, %s425_s2  ;;  %p431_p13 = scmp.lt.s32.totalorder %s425_s2, %s425_s2 }
  0x1e   :  { %p432_p0 = por %p431_p13, %p430_p12 }
  0x20   :  { %p433_p1 = pnand %p432_p0, %p426_p11 }
  0x22   :  { %436 = shalt.err (!%p433_p1)
}
  0x23   :  { %21 = dma.hbm_to_vmem [thread:$0]  %s577_s0, 64, %s19_s30, [#allocation3]  }
  0x24   :  { %s437_s18 = scalar_lea.hbm %s580_s3, 1024 }
  0x25   :  { %p438_p2 = scmp.ne.s32.totalorder %s580_s3, %s437_s18  ;;  %p441_p3 = scmp.lt.u32.totalorder %s437_s18, %s580_s3 }
  0x27   :  { %p443_p4 = pnand %p441_p3, %p438_p2 }
  0x29   :  { %446 = shalt.err (!%p443_p4)
}
  0x2a   :  { %s447_s23 = scalar_lea.vmem %s42_s6, 1024  ;;  %p452_p6 = scmp.lt.s32.totalorder %s42_s6, %s42_s6 }
  0x2b   :  { %p448_p5 = scmp.ne.s32.totalorder %s42_s6, %s447_s23  ;;  %p453_p7 = scmp.lt.s32.totalorder %s447_s23, %s447_s23 }
  0x2d   :  { %p454_p8 = por %p453_p7, %p452_p6 }
  0x2f   :  { %p455_p9 = pnand %p454_p8, %p448_p5 }
  0x31   :  { %458 = shalt.err (!%p455_p9)
}
  0x32   :  { %47 = dma.hbm_to_vmem [thread:$0]  %s580_s3, 1024, %s42_s6, [#allocation6], %s488_s25, %s488_s25, %s489_s26  }
  0x33   :  { %481 = dma.done.wait [#allocation3], 64  }
  0x34   :  { %482 = vsyncadd [#allocation3], 4294967232 }
  0x35   :  { %483 = dma.done.wait [#allocation6], 2048  }
  0x36   :  { %484 = vsyncadd [#allocation6], 4294965248  ;;  %v492_v0 = vmov 0.0   ;;  %vm493_vm0 = vmmov 0   ;;  %v377_v1 = vld [vmem:[#allocation5] sm:$0xff]   ;;  %v378_v2 = vld [vmem:[#allocation5 + $0x8] sm:$0xff]   ;;  %v76_v18 = vlaneseq }
  0x37   :  { %329 = vmatprep.subr.bf16.mxu0 %v492_v0  ;;  %345 = vmatprep.mubr.msk.bf16.mxu0 %vm493_vm0, %v492_v0  ;;  %v379_v3 = vld [vmem:[#allocation5 + $0x10] sm:$0xff]   ;;  %v385_v4 = vld [vmem:[#allocation7] sm:$0xff]   ;;  %v380_v5 = vld [vmem:[#allocation5 + $0x18] sm:$0xff]   ;;  %s494_s26 = smov [#allocation8]  }
  0x38   :  { %349 = vmatprep.subr.bf16.mxu1 %v492_v0  ;;  %365 = vmatprep.mubr.msk.bf16.mxu1 %vm493_vm0, %v492_v0  ;;  %v386_v6 = vld [vmem:[#allocation7 + $0x8] sm:$0xff]   ;;  %v381_v7 = vld [vmem:[#allocation5 + $0x20] sm:$0xff]   ;;  %v387_v8 = vld [vmem:[#allocation7 + $0x10] sm:$0xff]   ;;  %v77_v19 = vshrl.u32 %v76_v18, 7  ;;  %s285_s27 = sshll.u32 %s494_s26, 4  ;;  %s286_s27 = int_to_ptr.vmem [resolvable:$true] %s285_s27 }
  0x39   :  { %330 = vmatpush3.bf16.msra.mxu0 %v377_v1  ;;  %350 = vmatpush3.bf16.msra.mxu1 %v385_v4  ;;  %v382_v9 = vld [vmem:[#allocation5 + $0x28] sm:$0xff]   ;;  %v388_v10 = vld [vmem:[#allocation7 + $0x18] sm:$0xff]   ;;  %v383_v11 = vld [vmem:[#allocation5 + $0x30] sm:$0xff]   ;;  %p464_p11 = scmp.lt.s32.totalorder %s286_s27, %s286_s27 }
  0x3a   :  { %331 = vmatprep.subr.bf16.mxu0 %v492_v0  ;;  %351 = vmatprep.subr.bf16.mxu1 %v492_v0  ;;  %v389_v12 = vld [vmem:[#allocation7 + $0x20] sm:$0xff]   ;;  %v384_v13 = vld [vmem:[#allocation5 + $0x38] sm:$0xff]   ;;  %v390_v14 = vld [vmem:[#allocation7 + $0x28] sm:$0xff]   ;;  %v78_v20 = vsub.s32 0, %v77_v19  ;;  %v188_v30 = vsub.s32 1, %v77_v19 }
  0x3b   :  { %v59_v15 = vld [vmem:[#allocation2] sm:$0xf]  ;;  %v391_v16 = vld [vmem:[#allocation7 + $0x30] sm:$0xff]  }
  0x3c   :  { %v392_v17 = vld [vmem:[#allocation7 + $0x38] sm:$0xff]  }
  0x3d   :  { %332 = vmatpush3.bf16.msra.mxu0 %v378_v2  ;;  %352 = vmatpush3.bf16.msra.mxu1 %v386_v6  ;;  %v58_v21 = vld [vmem:[%s578_s1] sm:$0x3]  ;;  %s459_s1 = scalar_lea.vmem %s286_s27, 128 }
  0x3e   :  { %333 = vmatprep.subr.bf16.mxu0 %v492_v0  ;;  %353 = vmatprep.subr.bf16.mxu1 %v492_v0  ;;  %v79_v22 = vrot.slane %v58_v21, %v78_v20  ;;  %v189_v31 = vrot.slane %v58_v21, %v188_v30  ;;  %p460_p10 = scmp.ne.s32.totalorder %s286_s27, %s459_s1  ;;  %p465_p12 = scmp.lt.s32.totalorder %s459_s1, %s459_s1 }
  0x40   :  { %p466_p13 = por %p465_p12, %p464_p11 }
  0x41   :  { %334 = vmatpush3.bf16.msra.mxu0 %v379_v3  ;;  %354 = vmatpush3.bf16.msra.mxu1 %v387_v8 }
  0x42   :  { %335 = vmatprep.subr.bf16.mxu0 %v492_v0  ;;  %355 = vmatprep.subr.bf16.mxu1 %v492_v0  ;;  %p467_p0 = pnand %p466_p13, %p460_p10 }
  0x45   :  { %336 = vmatpush3.bf16.msra.mxu0 %v380_v5  ;;  %356 = vmatpush3.bf16.msra.mxu1 %v388_v10 }
  0x46   :  { %337 = vmatprep.subr.bf16.mxu0 %v492_v0  ;;  %357 = vmatprep.subr.bf16.mxu1 %v492_v0 }
  0x49   :  { %338 = vmatpush3.bf16.msra.mxu0 %v381_v7  ;;  %358 = vmatpush3.bf16.msra.mxu1 %v389_v12 }
  0x4a   :  { %339 = vmatprep.subr.bf16.mxu0 %v492_v0  ;;  %359 = vmatprep.subr.bf16.mxu1 %v492_v0 }
  0x4d   :  { %340 = vmatpush3.bf16.msra.mxu0 %v382_v9  ;;  %360 = vmatpush3.bf16.msra.mxu1 %v390_v14 }
  0x4e   :  { %341 = vmatprep.subr.bf16.mxu0 %v492_v0  ;;  %361 = vmatprep.subr.bf16.mxu1 %v492_v0 }
  0x51   :  { %342 = vmatpush3.bf16.msra.mxu0 %v383_v11  ;;  %362 = vmatpush3.bf16.msra.mxu1 %v391_v16 }
  0x52   :  { %343 = vmatprep.subr.bf16.mxu0 %v492_v0  ;;  %363 = vmatprep.subr.bf16.mxu1 %v492_v0 }
  0x55   :  { %344 = vmatpush3.bf16.msra.mxu0 %v384_v13  ;;  %364 = vmatpush3.bf16.msra.mxu1 %v392_v17 }
  0x58   :  { %346 = vmatmul.mubr.bf16.vlgmr.msra.gmra.mrb[0].mxu0 %v59_v15 }
 0x12b   :  { %v162_v23 = vpop.f32.mrb[0].mxu0 }
 0x12c   :  { %v163_v24 = vadd.f32 %v162_v23, %v79_v22  ;;  %v347_v25 = vpop.f32.mrb[1].mxu0 }
 0x12d   :  { %v165_v26 = vpop.f32.mrb[2].mxu0 }
 0x12e   :  { %v168_v27 = vmax.f32 %v163_v24, 0.0  ;;  %v348_v28 = vpop.f32.mrb[3].mxu0 }
 0x130   :  { %v169_v29 = vpack.c.bf16 %v168_v27, %v168_v27 }
 0x132   :  { %366 = vmatmul.mubr.bf16.vlgmr.msra.gmra.mrb[0].mxu1 %v169_v29 }
 0x205   :  { %v272_v32 = vpop.f32.mrb[0].mxu1 }
 0x206   :  { %v273_v33 = vadd.f32 %v272_v32, %v189_v31  ;;  %v367_v34 = vpop.f32.mrb[1].mxu1 }
 0x207   :  { %v275_v35 = vpop.f32.mrb[2].mxu1 }
 0x208   :  { %278 = vst [vmem:[#allocation8] sm:$0xff] %v273_v33  ;;  %v368_v36 = vpop.f32.mrb[3].mxu1 }
 0x209   :  { %470 = shalt.err (!%p467_p0)
}
 0x20a   :  { %s471_s30 = scalar_lea.hbm %s581_s4, 128 }
 0x20b   :  { %p472_p1 = scmp.ne.s32.totalorder %s581_s4, %s471_s30  ;;  %p475_p2 = scmp.lt.u32.totalorder %s471_s30, %s581_s4 }
 0x20d   :  { %p477_p3 = pnand %p475_p2, %p472_p1 }
 0x20f   :  { %480 = shalt.err (!%p477_p3)
}
 0x210   :  { %288 = dma.vmem_to_hbm [thread:$0]  %s286_s27, 128, %s581_s4, [#allocation4]  }
 0x211   :  { %485 = dma.done.wait [#allocation4], 128  }
 0x212   :  { %486 = vsyncadd [#allocation4], 4294967168 }
 0x213   :  { %292 = vsyncpa [#allocation3], 1 }
 0x214   :  { %293 = vsyncpa [#allocation6], 1 }
 0x215   :  { %294 = vsyncpa [#allocation4], 1 }

// kernel: tpu_custom_call.1
= control target key start
LH: loop header
LB: loop body
LE: loop exit
PB: predicated region body
PF: predicated region fallthrough
CT: control target
= control target key end

     0   :  { %8 = vsyncpa [#allocation4], 0  ;;  %s384_s0 = inlined_call_operand.hbm [shape: bf16[8,128], index: 0, kind: input, shape index: {}]   ;;  %s385_s1 = inlined_call_operand.hbm [shape: bf16[128,128], index: 1, kind: input, shape index: {}]   ;;  %s386_s2 = inlined_call_operand.vmem [shape: f32[1,128], index: 2, kind: input, shape index: {}]   ;;  %s387_s3 = inlined_call_operand.hbm [shape: bf16[8,128], index: 3, kind: output, shape index: {}]  }
   0x1   :  { %9 = vsyncpa [#allocation7], 0 }
   0x2   :  { %10 = vsyncpa [#allocation5], 0  ;;  %s311_s12 = smov [#allocation3]   ;;  %s312_s14 = smov [#allocation6]  }
   0x3   :  { %s17_s13 = sshll.u32 %s311_s12, 4  ;;  %s26_s15 = sshll.u32 %s312_s14, 4  ;;  %s18_s13 = int_to_ptr.vmem [resolvable:$true] %s17_s13  ;;  %s338_s15 = int_to_ptr.vmem [resolvable:$true] %s26_s15 }
   0x4   :  { %s239_s18 = scalar_lea.hbm %s384_s0, 64 }
   0x5   :  { %p240_p0 = scmp.ne.s32.totalorder %s384_s0, %s239_s18  ;;  %p243_p1 = scmp.lt.u32.totalorder %s239_s18, %s384_s0 }
   0x7   :  { %p245_p2 = pnand %p243_p1, %p240_p0 }
   0x9   :  { %248 = shalt.err (!%p245_p2)
}
   0xa   :  { %s249_s23 = scalar_lea.vmem %s18_s13, 64  ;;  %p254_p4 = scmp.lt.s32.totalorder %s18_s13, %s18_s13 }
   0xb   :  { %p250_p3 = scmp.ne.s32.totalorder %s18_s13, %s249_s23  ;;  %p255_p5 = scmp.lt.s32.totalorder %s249_s23, %s249_s23 }
   0xd   :  { %p256_p6 = por %p255_p5, %p254_p4 }
   0xf   :  { %p257_p7 = pnand %p256_p6, %p250_p3 }
  0x11   :  { %260 = shalt.err (!%p257_p7)
}
  0x12   :  { %20 = dma.hbm_to_vmem [thread:$0]  %s384_s0, 64, %s18_s13, [#allocation4]  }
  0x13   :  { %s261_s28 = scalar_lea.hbm %s385_s1, 1024 }
  0x14   :  { %p262_p8 = scmp.ne.s32.totalorder %s385_s1, %s261_s28  ;;  %p265_p9 = scmp.lt.u32.totalorder %s261_s28, %s385_s1 }
  0x16   :  { %p267_p10 = pnand %p265_p9, %p262_p8 }
  0x18   :  { %270 = shalt.err (!%p267_p10)
}
  0x19   :  { %s271_s6 = scalar_lea.vmem %s338_s15, 1024  ;;  %p276_p12 = scmp.lt.s32.totalorder %s338_s15, %s338_s15 }
  0x1a   :  { %p272_p11 = scmp.ne.s32.totalorder %s338_s15, %s271_s6  ;;  %p277_p13 = scmp.lt.s32.totalorder %s271_s6, %s271_s6 }
  0x1c   :  { %p278_p0 = por %p277_p13, %p276_p12 }
  0x1e   :  { %p279_p1 = pnand %p278_p0, %p272_p11 }
  0x20   :  { %282 = shalt.err (!%p279_p1)
}
  0x21   :  { %s313_s0 = smov 64   ;;  %s314_s7 = smov 4  }
  0x22   :  { %32 = dma.hbm_to_vmem [thread:$0]  %s385_s1, 1024, %s338_s15, [#allocation7], %s313_s0, %s313_s0, %s314_s7  }
  0x23   :  { %305 = dma.done.wait [#allocation4], 64  }
  0x24   :  { %306 = vsyncadd [#allocation4], 4294967232 }
  0x25   :  { %307 = dma.done.wait [#allocation7], 1024  }
  0x26   :  { %308 = vsyncadd [#allocation7], 4294966272  ;;  %v315_v0 = vmov 0.0   ;;  %vm316_vm0 = vmmov 0   ;;  %v231_v1 = vld [vmem:[#allocation6] sm:$0xff]   ;;  %v232_v2 = vld [vmem:[#allocation6 + $0x8] sm:$0xff]  }
  0x27   :  { %204 = vmatprep.subr.bf16.mxu0 %v315_v0  ;;  %220 = vmatprep.mubr.msk.bf16.mxu0 %vm316_vm0, %v315_v0  ;;  %v233_v3 = vld [vmem:[#allocation6 + $0x10] sm:$0xff]   ;;  %v234_v4 = vld [vmem:[#allocation6 + $0x18] sm:$0xff]   ;;  %v235_v5 = vld [vmem:[#allocation6 + $0x20] sm:$0xff]   ;;  %s317_s11 = smov [#allocation8]  }
  0x28   :  { %205 = vmatpush3.bf16.msra.mxu0 %v231_v1  ;;  %v236_v6 = vld [vmem:[#allocation6 + $0x28] sm:$0xff]   ;;  %v237_v7 = vld [vmem:[#allocation6 + $0x30] sm:$0xff]   ;;  %v238_v8 = vld [vmem:[#allocation6 + $0x38] sm:$0xff]   ;;  %s176_s12 = sshll.u32 %s317_s11, 4  ;;  %s177_s12 = int_to_ptr.vmem [resolvable:$true] %s176_s12 }
  0x29   :  { %206 = vmatprep.subr.bf16.mxu0 %v315_v0  ;;  %v48_v9 = vld [vmem:[#allocation3] sm:$0xf]  ;;  %s283_s13 = scalar_lea.vmem %s177_s12, 64  ;;  %p288_p3 = scmp.lt.s32.totalorder %s177_s12, %s177_s12 }
  0x2a   :  { %v194_v10 = vld [vmem:[%s386_s2] ss:$0 sm:$0xff]  ;;  %p284_p2 = scmp.ne.s32.totalorder %s177_s12, %s283_s13  ;;  %p289_p4 = scmp.lt.s32.totalorder %s283_s13, %s283_s13 }
  0x2c   :  { %207 = vmatpush3.bf16.msra.mxu0 %v232_v2  ;;  %p290_p5 = por %p289_p4, %p288_p3 }
  0x2d   :  { %208 = vmatprep.subr.bf16.mxu0 %v315_v0 }
  0x2e   :  { %p291_p6 = pnand %p290_p5, %p284_p2 }
  0x30   :  { %209 = vmatpush3.bf16.msra.mxu0 %v233_v3 }
  0x31   :  { %210 = vmatprep.subr.bf16.mxu0 %v315_v0 }
  0x34   :  { %211 = vmatpush3.bf16.msra.mxu0 %v234_v4 }
  0x35   :  { %212 = vmatprep.subr.bf16.mxu0 %v315_v0 }
  0x38   :  { %213 = vmatpush3.bf16.msra.mxu0 %v235_v5 }
  0x39   :  { %214 = vmatprep.subr.bf16.mxu0 %v315_v0 }
  0x3c   :  { %215 = vmatpush3.bf16.msra.mxu0 %v236_v6 }
  0x3d   :  { %216 = vmatprep.subr.bf16.mxu0 %v315_v0 }
  0x40   :  { %217 = vmatpush3.bf16.msra.mxu0 %v237_v7 }
  0x41   :  { %218 = vmatprep.subr.bf16.mxu0 %v315_v0 }
  0x44   :  { %219 = vmatpush3.bf16.msra.mxu0 %v238_v8 }
  0x47   :  { %221 = vmatmul.mubr.bf16.vlgmr.msra.gmra.mrb[0].mxu0 %v48_v9 }
 0x11a   :  { %v147_v11 = vpop.f32.mrb[0].mxu0 }
 0x11b   :  { %v166_v12 = vadd.f32 %v194_v10, %v147_v11  ;;  %v222_v13 = vpop.f32.mrb[1].mxu0 }
 0x11c   :  { %v150_v14 = vpop.f32.mrb[2].mxu0 }
 0x11d   :  { %v167_v15 = vmax.f32 %v166_v12, 0.0  ;;  %v223_v16 = vpop.f32.mrb[3].mxu0 }
 0x11f   :  { %v168_v17 = vpack.c.bf16 %v167_v15, %v167_v15 }
 0x121   :  { %169 = vst [vmem:[#allocation8] sm:$0xf] %v168_v17 }
 0x122   :  { %294 = shalt.err (!%p291_p6)
}
 0x123   :  { %s295_s15 = scalar_lea.hbm %s387_s3, 64 }
 0x124   :  { %p296_p7 = scmp.ne.s32.totalorder %s387_s3, %s295_s15  ;;  %p299_p8 = scmp.lt.u32.totalorder %s295_s15, %s387_s3 }
 0x126   :  { %p301_p9 = pnand %p299_p8, %p296_p7 }
 0x128   :  { %304 = shalt.err (!%p301_p9)
}
 0x129   :  { %179 = dma.vmem_to_hbm [thread:$0]  %s177_s12, 64, %s387_s3, [#allocation5]  }
 0x12a   :  { %309 = dma.done.wait [#allocation5], 64  }
 0x12b   :  { %310 = vsyncadd [#allocation5], 4294967232 }
 0x12c   :  { %183 = vsyncpa [#allocation4], 1 }
 0x12d   :  { %184 = vsyncpa [#allocation7], 1 }
 0x12e   :  { %185 = vsyncpa [#allocation5], 1 }

</bundles_post_ra>
